<compile_context>
chip_gen: v7x
topology: tpu7x:2x2x1
jax: 0.10.0
libtpu: 0.0.40
codegen_flags: <defaults>
</compile_context>

<pallas_src>
import math

import jax
import jax.numpy as jnp
from jax import lax
from jax.experimental import pallas as pl
from jax.experimental.pallas import tpu as pltpu


# ----------------------------------------------------------------------------
# generation-aware VMEM limit (v5e/v6e: 128 MiB, v7x: 64 MiB per TensorCore)
# ----------------------------------------------------------------------------
_VMEM_LIMIT_CACHE = None


def _vmem_limit_bytes():
    global _VMEM_LIMIT_CACHE
    if _VMEM_LIMIT_CACHE is None:
        try:
            cap = int(pltpu.get_tpu_info().vmem_capacity_bytes)
        except Exception:
            cap = 64 * 1024 * 1024               # conservative (v7x-sized) fallback
        _VMEM_LIMIT_CACHE = min((cap * 3) // 4, 96 * 1024 * 1024)
    return _VMEM_LIMIT_CACHE


# Tile preference tables (MXU-shaped first; all satisfy (8,128) divisibility;
# final fallback = full dim, which is always legal).
_M_PREFS = (1024, 512, 256, 128, 64, 32, 16, 8)   # sublane-aligned
_N_PREFS = (512, 256, 128)                        # lane-aligned output tiles
_K_PREFS = (512, 256, 128)                        # lane-aligned contraction tiles
_ATTN_PREFS = (512, 256, 128, 64, 32, 16, 8)      # attention seq tiles


def _pick_tile(dim, prefs):
    """Largest preferred tile that evenly divides `dim`, else the full dim."""
    for p in prefs:
        if p <= dim and dim % p == 0:
            return p
    return dim


def _attn_tile(seq, row_bytes, budget=2 * 1024 * 1024):
    """Largest seq tile dividing `seq` whose (tile, E) block stays <= budget."""
    smallest = None
    for t in _ATTN_PREFS:
        if t <= seq and seq % t == 0:
            smallest = t
            if t * row_bytes <= budget:
                return t
    return smallest if smallest is not None else seq


# ----------------------------------------------------------------------------
# Kernel 1: tiled matmul, x (tm,tk) x w (tk,tn), bf16 operands, f32 accumulator.
#   Used for the fused QKV projection, the per-tensor projections, and the
#   output projection.  K axis is the last grid axis ("arbitrary").
# ----------------------------------------------------------------------------
def _matmul_kernel(x_ref, w_ref, o_ref, acc_ref):
    @pl.when(pl.program_id(2) == 0)
    def _():
        acc_ref[...] = jnp.zeros_like(acc_ref)

    acc_ref[...] += jnp.dot(x_ref[...].astype(jnp.bfloat16), w_ref[...],
                            preferred_element_type=jnp.float32)

    @pl.when(pl.program_id(2) == pl.num_programs(2) - 1)
    def _():
        o_ref[...] = acc_ref[...].astype(o_ref.dtype)


def matmul(x, w, out_dtype=None):
    """x: (M, K);  w: (K, N) pre-transposed bf16 weight.  Returns (M, N)."""
    M, K = x.shape
    K2, N = w.shape
    assert K == K2
    tm = _pick_tile(M, _M_PREFS)
    tn = _pick_tile(N, _N_PREFS)
    tk = _pick_tile(K, _K_PREFS)
    return pl.pallas_call(
        _matmul_kernel,
        out_shape=jax.ShapeDtypeStruct((M, N), out_dtype or x.dtype),
        grid_spec=pltpu.PrefetchScalarGridSpec(
            num_scalar_prefetch=0,
            grid=(M // tm, N // tn, K // tk),
            in_specs=[pl.BlockSpec((tm, tk), lambda m, n, k: (m, k)),
                      pl.BlockSpec((tk, tn), lambda m, n, k: (k, n))],
            out_specs=pl.BlockSpec((tm, tn), lambda m, n, k: (m, n)),
            scratch_shapes=[pltpu.VMEM((tm, tn), jnp.float32)],
        ),
        compiler_params=pltpu.CompilerParams(
            dimension_semantics=("parallel", "parallel", "arbitrary"),
            vmem_limit_bytes=_vmem_limit_bytes()),
    )(x, w)


# ----------------------------------------------------------------------------
# Kernel 2: flash-style multi-head attention.
#   Inputs are (1, tile, E) activation slabs; per-head Q/K/V are contiguous
#   lane slices (no sublane gather / transpose, no host head-split transpose).
#   1/sqrt(Dh) is already folded into W_q.  Non-causal, no mask, no dropout.
# ----------------------------------------------------------------------------
def _make_flash_kernel(n_head, head_dim):
    H, Dh = n_head, head_dim

    def kernel(q_ref, k_ref, v_ref, o_ref, m_sc, l_sc, acc_sc):
        kv = pl.program_id(2)
        last = kv == pl.num_programs(2) - 1

        @pl.when(kv == 0)
        def _():
            m_sc[...] = jnp.full(m_sc.shape, -jnp.inf, m_sc.dtype)
            l_sc[...] = jnp.zeros(l_sc.shape, l_sc.dtype)
            acc_sc[...] = jnp.zeros(acc_sc.shape, acc_sc.dtype)

        # Static unroll over heads: everything below is plain 2-D.
        for h in range(H):
            lo = h * Dh
            qh = q_ref[0, :, lo:lo + Dh].astype(jnp.bfloat16)   # (tq , Dh)
            kh = k_ref[0, :, lo:lo + Dh].astype(jnp.bfloat16)   # (tkv, Dh)
            vh = v_ref[0, :, lo:lo + Dh].astype(jnp.bfloat16)   # (tkv, Dh)

            # q . k^T without materializing the transpose (contract Dh with Dh)
            s = lax.dot_general(qh, kh, (((1,), (1,)), ((), ())),
                                preferred_element_type=jnp.float32)   # (tq, tkv)

            m_prev = m_sc[h]                                          # (tq, 1)
            m_new = jnp.maximum(m_prev, s.max(axis=-1, keepdims=True))
            alpha = jnp.exp(m_prev - m_new)
            p = jnp.exp(s - m_new)                                    # f32, EUP
            l_sc[h] = alpha * l_sc[h] + p.sum(axis=-1, keepdims=True)
            acc_sc[h] = alpha * acc_sc[h] + lax.dot_general(
                p.astype(jnp.bfloat16), vh, (((1,), (0,)), ((), ())),
                preferred_element_type=jnp.float32)                   # (tq, Dh)
            m_sc[h] = m_new

            @pl.when(last)
            def _():
                lsum = l_sc[h]
                inv = pl.reciprocal(lsum, approx=True)       # EUP slot
                inv = inv * (2.0 - lsum * inv)               # Newton -> ~f32 exact
                o_ref[0, h] = (acc_sc[h] * inv).astype(o_ref.dtype)

    return kernel


def flash_mha(q_arr, k_arr, v_arr, *, n_embed, n_head,
              q_col=0, k_col=0, v_col=0, out_dtype=jnp.bfloat16):
    """Flash attention over (B, S, *) activation slabs.

    Each input block is a (1, tile, n_embed) slab whose block-column along the
    last axis is selected by {q,k,v}_col -- this lets the fused (B, S, 3E) QKV
    projection output be consumed directly (pass the same array three times).
    Output is (B, H, Sq, Dh).
    """
    B, Sq = q_arr.shape[0], q_arr.shape[1]
    Skv = k_arr.shape[1]
    assert v_arr.shape[1] == Skv
    E, H = n_embed, n_head
    Dh = E // H
    dsize = jnp.dtype(q_arr.dtype).itemsize
    tq = _attn_tile(Sq, E * dsize)
    tkv = _attn_tile(Skv, E * dsize)

    q_spec = pl.BlockSpec((1, tq, E), lambda b, qi, ki: (b, qi, q_col))
    k_spec = pl.BlockSpec((1, tkv, E), lambda b, qi, ki: (b, ki, k_col))
    v_spec = pl.BlockSpec((1, tkv, E), lambda b, qi, ki: (b, ki, v_col))
    # q / output block indices are ki-independent -> stay VMEM-resident across
    # the kv reduction axis (no re-DMA / re-writeback per kv step).
    o_spec = pl.BlockSpec((1, H, tq, Dh), lambda b, qi, ki: (b, 0, qi, 0))

    return pl.pallas_call(
        _make_flash_kernel(H, Dh),
        out_shape=jax.ShapeDtypeStruct((B, H, Sq, Dh), out_dtype),
        grid_spec=pltpu.PrefetchScalarGridSpec(
            num_scalar_prefetch=0,
            grid=(B, Sq // tq, Skv // tkv),
            in_specs=[q_spec, k_spec, v_spec],
            out_specs=o_spec,
            scratch_shapes=[
                pltpu.VMEM((H, tq, 1), jnp.float32),    # running max
                pltpu.VMEM((H, tq, 1), jnp.float32),    # running sum
                pltpu.VMEM((H, tq, Dh), jnp.float32),   # output accumulator
            ],
        ),
        compiler_params=pltpu.CompilerParams(
            dimension_semantics=("parallel", "parallel", "arbitrary"),
            vmem_limit_bytes=_vmem_limit_bytes()),
    )(q_arr, k_arr, v_arr)


# ----------------------------------------------------------------------------
# Module wrapper
# ----------------------------------------------------------------------------
class SelfAttentionPallas:
    """Pallas TPU port of the PyTorch SelfAttention module (eval / inference).

    torch nn.Linear weights are (out_features, in_features); f32 copies are
    kept for the reference, and pre-transposed (in, out) bf16 copies are built
    once for the kernels.  The 1/sqrt(head_dim) scale is folded into W_q.
    """

    def __init__(self, n_embed, n_head, key, is_causal=False, dropout_p=0.1):
        assert n_embed % n_head == 0, "n_embed must be divisible by n_head"
        self.n_embed = n_embed
        self.n_head = n_head
        self.head_dim = n_embed // n_head
        self.is_causal = is_causal
        self.dropout_p = dropout_p          # eval path: dropout not applied
        k1, k2, k3, k4 = jax.random.split(key, 4)
        bound = 1.0 / math.sqrt(n_embed)
        init = lambda kk: jax.random.uniform(
            kk, (n_embed, n_embed), jnp.float32, -bound, bound)
        # torch layout (out_features, in_features), f32 (reference weights)
        self.W_q = init(k1)
        self.W_k = init(k2)
        self.W_v = init(k3)
        self.W_o = init(k4)
        scale = 1.0 / math.sqrt(self.head_dim)
        # pre-transposed (in, out) bf16 kernel weights; scale folded into W_q
        self.Wq_t = (self.W_q * scale).T.astype(jnp.bfloat16)
        self.Wk_t = self.W_k.T.astype(jnp.bfloat16)
        self.Wv_t = self.W_v.T.astype(jnp.bfloat16)
        self.Wo_t = self.W_o.T.astype(jnp.bfloat16)
        # stacked (E, 3E) weight for the fused single-matmul QKV fast path
        self.Wqkv_t = jnp.concatenate([self.Wq_t, self.Wk_t, self.Wv_t], axis=1)

    def __call__(self, q, k, v, mask=None):
        if not all(x.shape[-1] == q.shape[-1] for x in (k, v)):
            raise ValueError("All inputs must have the same embedding dimension")
        if mask is not None or self.is_causal:
            # TODO(synk): attn_mask (B,1,1,S) and is_causal=True paths not wired.
            raise NotImplementedError("mask / causal attention not implemented")
        B, S, E = q.shape
        H = self.n_head

        if (q is k) and (k is v) and E % 128 == 0:
            # Self-attention fast path: one fused matmul against (E, 3E) weight;
            # flash reads Q/K/V out of the (B, S, 3E) result via block columns.
            qkv = matmul(q.reshape(B * S, E), self.Wqkv_t,
                         out_dtype=jnp.bfloat16).reshape(B, S, 3 * E)
            att = flash_mha(qkv, qkv, qkv, n_embed=E, n_head=H,
                            q_col=0, k_col=1, v_col=2)
        else:
            # General path (distinct q / k / v, e.g. cross-attention)
            Skv = k.shape[1]
            qp = matmul(q.reshape(B * S, E), self.Wq_t,
                        out_dtype=jnp.bfloat16).reshape(B, S, E)
            kp = matmul(k.reshape(B * Skv, E), self.Wk_t,
                        out_dtype=jnp.bfloat16).reshape(B, Skv, E)
            vp = matmul(v.reshape(B * Skv, E), self.Wv_t,
                        out_dtype=jnp.bfloat16).reshape(B, Skv, E)
            att = flash_mha(qp, kp, vp, n_embed=E, n_head=H)

        # att is (B, H, S, Dh).  Replicate PyTorch's .contiguous().view(B,S,E)
        # WITHOUT transposing heads back (quirk of the original module) -- a
        # free row-major reshape.
        out = matmul(att.reshape(B * S, E), self.Wo_t, out_dtype=q.dtype)
        return out.reshape(B, S, E)


# ----------------------------------------------------------------------------
# Pure-JAX f32 reference for correctness check (replicates the torch quirk)
# ----------------------------------------------------------------------------
def reference(mod, q, k, v):
    B, S, E = q.shape
    H, Dh = mod.n_head, mod.head_dim
    qp = q @ mod.W_q.T
    kp = k @ mod.W_k.T
    vp = v @ mod.W_v.T
    qh = qp.reshape(B, -1, H, Dh).transpose(0, 2, 1, 3)
    kh = kp.reshape(B, -1, H, Dh).transpose(0, 2, 1, 3)
    vh = vp.reshape(B, -1, H, Dh).transpose(0, 2, 1, 3)
    s = jnp.einsum("bhqd,bhkd->bhqk", qh, kh) / math.sqrt(Dh)
    p = jax.nn.softmax(s, axis=-1)
    att = jnp.einsum("bhqk,bhkd->bhqd", p, vh)
    att = att.reshape(B, S, E)       # no head re-transpose (torch quirk)
    return att @ mod.W_o.T


if __name__ == "__main__":
    key = jax.random.PRNGKey(0)
    k_mod, k_q, k_k, k_v = jax.random.split(key, 4)

    B, S, E, H = 2, 128, 256, 4       # head_dim = 64
    mod = SelfAttentionPallas(n_embed=E, n_head=H, key=k_mod)

    x = jax.random.normal(k_q, (B, S, E), jnp.float32)

    # self-attention fast path (q = k = v): fused QKV projection + flash MHA
    out_self = mod(x, x, x)
    jax.block_until_ready(out_self)
    ref_self = reference(mod, x, x, x)
    assert out_self.shape == (B, S, E)
    assert jnp.allclose(out_self, ref_self, atol=2.5e-2, rtol=2.5e-2), \
        "fast path mismatch vs reference"

    # general path (distinct q, k, v)
    kk = jax.random.normal(k_k, (B, S, E), jnp.float32)
    vv = jax.random.normal(k_v, (B, S, E), jnp.float32)
    out_gen = mod(x, kk, vv)
    jax.block_until_ready(out_gen)
    ref_gen = reference(mod, x, kk, vv)
    assert out_gen.shape == (B, S, E)
    assert jnp.allclose(out_gen, ref_gen, atol=2.5e-2, rtol=2.5e-2), \
        "general path mismatch vs reference"

    print("KERNEL_OK")
</pallas_src>

<mosaic_0001>
module attributes {stable_mosaic.version = 11 : i64} {
  func.func @_matmul_kernel(%arg0: i32, %arg1: i32, %arg2: i32, %arg3: memref<256x256xf32, #tpu.memory_space<vmem>>, %arg4: memref<256x256xbf16, #tpu.memory_space<vmem>>, %arg5: memref<256x256xbf16, #tpu.memory_space<vmem>>, %arg6: memref<256x256xf32, #tpu.memory_space<vmem>>) attributes {dimension_semantics = [#tpu.dimension_semantics<parallel>, #tpu.dimension_semantics<parallel>, #tpu.dimension_semantics<arbitrary>], iteration_bounds = array<i64: 1, 3, 1>, scalar_prefetch = 0 : i64, scratch_operands = 1 : i64, tpu.core_type = #tpu.core_type<tc>, window_params = [{transform_indices = @transform_0, window_bounds = array<i64: 256, 256>}, {transform_indices = @transform_1, window_bounds = array<i64: 256, 256>}, {transform_indices = @transform_2, window_bounds = array<i64: 256, 256>}]} {
    %c0_i32 = arith.constant 0 : i32
    %0 = arith.cmpi eq, %arg2, %c0_i32 : i32
    %1 = arith.extui %0 : i1 to i32
    %c0_i32_0 = arith.constant 0 : i32
    %2 = arith.cmpi ne, %1, %c0_i32_0 : i32
    scf.if %2 {
      %cst_10 = arith.constant 0.000000e+00 : f32
      %13 = vector.broadcast %cst_10 : f32 to vector<256x256xf32>
      %c0_11 = arith.constant 0 : index
      %c0_12 = arith.constant 0 : index
      %14 = vector.load %arg6[%c0_11, %c0_12] : memref<256x256xf32, #tpu.memory_space<vmem>>, vector<256x256xf32>
      tpu.vector_store %arg6[%c0_11, %c0_12], %13 {strides = array<i32>} : memref<256x256xf32, #tpu.memory_space<vmem>>, vector<256x256xf32>,
    } else {
    }
    %c0 = arith.constant 0 : index
    %c0_1 = arith.constant 0 : index
    %3 = vector.load %arg6[%c0, %c0_1] : memref<256x256xf32, #tpu.memory_space<vmem>>, vector<256x256xf32>
    %c0_2 = arith.constant 0 : index
    %c0_3 = arith.constant 0 : index
    %4 = vector.load %arg3[%c0_2, %c0_3] : memref<256x256xf32, #tpu.memory_space<vmem>>, vector<256x256xf32>
    %5 = arith.truncf %4 : vector<256x256xf32> to vector<256x256xbf16>
    %c0_4 = arith.constant 0 : index
    %c0_5 = arith.constant 0 : index
    %6 = vector.load %arg4[%c0_4, %c0_5] : memref<256x256xbf16, #tpu.memory_space<vmem>>, vector<256x256xbf16>
    %cst = arith.constant dense<0.000000e+00> : vector<256x256xf32>
    %7 = tpu.matmul %5, %6, %cst {dimension_numbers = #tpu.dot_dimension_numbers<[1], [0], [0], [1], [0, 0, 1, 1], [], []>} : vector<256x256xbf16>, vector<256x256xbf16>, vector<256x256xf32> -> vector<256x256xf32>
    %8 = arith.addf %3, %7 : vector<256x256xf32>
    %c0_6 = arith.constant 0 : index
    %c0_7 = arith.constant 0 : index
    %9 = vector.load %arg6[%c0_6, %c0_7] : memref<256x256xf32, #tpu.memory_space<vmem>>, vector<256x256xf32>
    tpu.vector_store %arg6[%c0_6, %c0_7], %8 {strides = array<i32>} : memref<256x256xf32, #tpu.memory_space<vmem>>, vector<256x256xf32>,
    %c0_i32_8 = arith.constant 0 : i32
    %10 = arith.cmpi eq, %arg2, %c0_i32_8 : i32
    %11 = arith.extui %10 : i1 to i32
    %c0_i32_9 = arith.constant 0 : i32
    %12 = arith.cmpi ne, %11, %c0_i32_9 : i32
    scf.if %12 {
      %c0_10 = arith.constant 0 : index
      %c0_11 = arith.constant 0 : index
      %13 = vector.load %arg6[%c0_10, %c0_11] : memref<256x256xf32, #tpu.memory_space<vmem>>, vector<256x256xf32>
      %14 = arith.truncf %13 : vector<256x256xf32> to vector<256x256xbf16>
      %c0_12 = arith.constant 0 : index
      %c0_13 = arith.constant 0 : index
      %15 = vector.load %arg5[%c0_12, %c0_13] : memref<256x256xbf16, #tpu.memory_space<vmem>>, vector<256x256xbf16>
      tpu.vector_store %arg5[%c0_12, %c0_13], %14 {strides = array<i32>} : memref<256x256xbf16, #tpu.memory_space<vmem>>, vector<256x256xbf16>,
    } else {
    }
    return
  }
  func.func @transform_0(%arg0: i32, %arg1: i32, %arg2: i32) -> (i32, i32) {
    %c0_i32 = arith.constant 0 : i32
    return %arg0, %arg2 : i32, i32
  }
  func.func @transform_1(%arg0: i32, %arg1: i32, %arg2: i32) -> (i32, i32) {
    %c0_i32 = arith.constant 0 : i32
    return %arg2, %arg1 : i32, i32
  }
  func.func @transform_2(%arg0: i32, %arg1: i32, %arg2: i32) -> (i32, i32) {
    %c0_i32 = arith.constant 0 : i32
    return %arg0, %arg1 : i32, i32
  }
}

</mosaic_0001>

<bundles_post_ra>
// kernel: tpu_custom_call.1
= control target key start
LH: loop header
LB: loop body
LE: loop exit
PB: predicated region body
PF: predicated region fallthrough
CT: control target
= control target key end

     0   :  { %7 = vsyncpa [#allocation4], 0  ;;  %s2110_s0 = inlined_call_operand.hbm [shape: f32[256,256], index: 0, kind: input, shape index: {}]   ;;  %s2111_s1 = inlined_call_operand.hbm [shape: bf16[256,768], index: 1, kind: input, shape index: {}]   ;;  %s2112_s2 = inlined_call_operand.hbm [shape: bf16[256,768], index: 2, kind: output, shape index: {}]  }
   0x1   :  { %8 = vsyncpa [#allocation7], 0 }
   0x2   :  { %10 = vsyncpa [#allocation7 + $0x1], 0 }
   0x3   :  { %11 = vsyncpa [#allocation5], 0 }
   0x4   :  { %13 = vsyncpa [#allocation5 + $0x1], 0  ;;  %s1826_s9 = smov 0   ;;  %s1828_s10 = smov 0  }
   0x5   :  { %s1830_s11 = smov 0   ;;  %s1832_s12 = smov 0  }
   0x6   :  { %s1834_s13 = smov 0   ;;  %s1836_s14 = smov 0  }
   0x7 LB: > { %s1378_s15 = sadd.s32 4294967295, %s1798_s14   ;;  %s1379_s16 = sadd.s32 4294967294, %s1798_s14   ;;  %s1798_s14 = sphi %s1836_s14, %s19_s14   ;;  %s1794_s13 = sphi %s1834_s13, %s2137_s13   ;;  %s1790_s12 = sphi %s1832_s12, %s2136_s12   ;;  %s1786_s11 = sphi %s1830_s11, %s2135_s11   ;;  %s1782_s10 = sphi %s1828_s10, %s2134_s10   ;;  %s1778_s9 = sphi %s1826_s9, %s2133_s9  }
   0x8   : > { %p82_p0 = scmp.ne.s32.totalorder %s1786_s11, %s1782_s10  ;;  %p83_p1 = scmp.eq.s32.totalorder %s1798_s14, 0 }
   0x9   : > { %p88_p2 = scmp.ne.s32.totalorder %s1782_s10, %s1778_s9  ;;  %p1863_p3 = scmp.eq.s32.totalorder %s1378_s15, 0 }
   0xa   : > { %p1867_p4 = por %p83_p1, %p82_p0  ;;  %p114_p5 = scmp.eq.s32.totalorder %s1378_s15, 2 }
   0xb   : > { %s2119_s17 = scalar_select %p1863_p3, 1, 0 }
   0xc   : > { %p1873_p6 = por %p1863_p3, %p88_p2  ;;  %p120_p7 = scmp.eq.s32.totalorder %s1379_s16, 2 }
   0xd   : > { %p1877_p8 = por %p114_p5, %p82_p0  ;;  %p1380_p9 = scmp.ge.s32.totalorder %s1798_s14, 1 }
   0xe   : > { %s2121_s19 = scalar_select %p1873_p6, 1, 0 }
   0xf   : > { %s2122_s20 = scalar_select %p1877_p8, 1, 0 }
  0x10   : > { %p1882_p10 = por %p120_p7, %p88_p2  ;;  %p127_p11 = scmp.lt.s32.totalorder %s1798_s14, 4 }
  0x11   : > { %s1800_s23 = smov [#allocation3]   ;;  %p1546_p0 = scmp.lt.s32.totalorder %s1798_s14, 3 }
  0x12   : > { %s2123_s21 = scalar_select %p1882_p10, 1, 0 }
  0x13   : > { %p1887_p12 = pnand %p1380_p9, %p127_p11  ;;  %s145_s24 = sshll.u32 %s1800_s23, 4  ;;  %s146_s24 = int_to_ptr.vmem [resolvable:$true] %s145_s24 }
  0x14   : > { %p1902_p2 = pnand %p1546_p0, %p1867_p4  ;;  %s34_s27 = sadd.s32 1, %s1794_s13 }
  0x15   : > { %s2124_s22 = scalar_select %p1887_p12, 1, 0 }
  0x16   : > { %p1533_p13 = pneg %p1887_p12  ;;  %s1654_s30 = scalar_lea.hbm %s2110_s0, 8192 }
  0x17   : > { %s2126_s26 = scalar_select %p1902_p2, 1, 0 }
  0x18   : > { %p1896_p1 = pnand %p1533_p13, %p1863_p3  ;;  %p1655_p5 = scmp.ne.s32.totalorder %s2110_s0, %s1654_s30 }
  0x19   : > { %p1661_p4 = scmp.lt.u32.totalorder %s1654_s30, %s2110_s0 }
  0x1a   : > { %p1656_p7 = pneg %p1896_p1 }
  0x1c   : > { %p1657_p9 = pnand %p1656_p7, %p1655_p5 }
  0x1e   : > { %p1658_p11 = pneg %p1657_p9 }
  0x20   : > { %p1663_p13 = pnand %p1661_p4, %p1658_p11 }
  0x22   : > { %1666 = shalt.err (!%p1663_p13)
}
  0x23   : > { %s1667_s7 = scalar_lea.vmem %s146_s24, 8192  ;;  %p1675_p6 = scmp.lt.s32.totalorder %s146_s24, %s146_s24 }
  0x24   : > { %p1668_p0 = scmp.ne.s32.totalorder %s146_s24, %s1667_s7  ;;  %p1676_p3 = scmp.lt.s32.totalorder %s1667_s7, %s1667_s7 }
  0x26   : > { %p1670_p10 = pnand %p1668_p0, %p1656_p7  ;;  %p1677_p12 = por %p1676_p3, %p1675_p6 }
  0x28   : > { %p1671_p8 = pneg %p1670_p10 }
  0x2a   : > { %p1678_p2 = pnand %p1677_p12, %p1671_p8 }
  0x2c   : > { %1681 = shalt.err (!%p1678_p2)
}
  0x2d   : > { %s1801_s8 = smov 256   ;;  %s1802_s15 = smov 16  }
  0x2e   : > { %1536 = dma.hbm_to_vmem [thread:$0]  (!%p1896_p1), %s2110_s0, 8192, %s146_s24, [#allocation4], %s1801_s8, %s1801_s8, %s1802_s15  }
  0x2f   : > { %p36_p5 = scmp.ge.s32.totalorder %s34_s27, 3  ;;  %s75_s23 = sadd.s32 1, %s1786_s11 }
  0x30   : > { %s159_s28 = sand.u32 1, %s1786_s11   ;;  %s1459_s3 = sshll.u32 %s1794_s13, 7 }
  0x31   : > { %s2139_s27 = smov (%p36_p5, %s34_s27), 0  ;;  %s1383_s29 = sshll.u32 %s159_s28, 8 }
  0x32   : > { %s71_s30 = ssub.s32 %s1794_s13, %s2139_s27  ;;  %s1933_s25 = scalar_lea.hbm %s2111_s1, %s1459_s3 }
  0x33   : > { %p73_p3 = scmp.eq.s32.totalorder %s71_s30, 0  ;;  %s163_s24 = scalar_lea.vmem [#allocation6], %s1383_s29 }
  0x34   : > { %s173_s6 = sshll.u32 %s163_s24, 4  ;;  %s1940_s8 = scalar_lea.sflag [#allocation7], %s159_s28  ;;  %s1938_s6 = int_to_ptr.vmem [resolvable:$true] %s173_s6 }
  0x35   : > { %s1936_s7 = scalar_select %p73_p3, %s1786_s11, %s75_s23  }
  0x36   : > { %s1682_s15 = scalar_lea.hbm %s1933_s25, 4096  ;;  %p2127_p8 = scmp.ne.s32.totalorder %s2126_s26, 0 }
  0x37   : > { %p1683_p6 = scmp.ne.s32.totalorder %s1933_s25, %s1682_s15  ;;  %s1687_s30 = scalar_lea.hbm %s2111_s1, 12288 }
  0x38   : > { %p1684_p10 = pneg %p2127_p8  ;;  %p1688_p2 = scmp.lt.u32.totalorder %s1933_s25, %s2111_s1 }
  0x39   : > { %p1689_p7 = scmp.lt.u32.totalorder %s1687_s30, %s1682_s15  ;;  %p1691_p11 = scmp.lt.u32.totalorder %s1682_s15, %s1933_s25 }
  0x3a   : > { %p1685_p12 = pnand %p1684_p10, %p1683_p6 }
  0x3b   : > { %p1690_p9 = por %p1689_p7, %p1688_p2 }
  0x3c   : > { %p1686_p1 = pneg %p1685_p12 }
  0x3d   : > { %p1692_p4 = por %p1691_p11, %p1690_p9 }
  0x3f   : > { %p1693_p13 = pnand %p1692_p4, %p1686_p1 }
  0x41   : > { %1696 = shalt.err (!%p1693_p13)
}
  0x42   : > { %s1697_s23 = scalar_lea.vmem %s1938_s6, 4096  ;;  %s1803_s28 = smov [#allocation6]  }
  0x43   : > { %p1698_p0 = scmp.ne.s32.totalorder %s1938_s6, %s1697_s23  ;;  %s1702_s4 = sshll.u32 %s1803_s28, 4  ;;  %s1703_s4 = int_to_ptr.vmem [resolvable:$false] %s1702_s4 }
  0x44   : > { %s1704_s5 = scalar_lea.vmem %s1703_s4, 8192  ;;  %p1705_p6 = scmp.lt.s32.totalorder %s1938_s6, %s1703_s4 }
  0x45   : > { %p1700_p5 = pnand %p1698_p0, %p1684_p10  ;;  %p1706_p12 = scmp.lt.s32.totalorder %s1704_s5, %s1697_s23 }
  0x47   : > { %p1701_p3 = pneg %p1700_p5  ;;  %p1707_p2 = por %p1706_p12, %p1705_p6 }
  0x49   : > { %p1708_p7 = pnand %p1707_p2, %p1701_p3 }
  0x4b   : > { %1711 = shalt.err (!%p1708_p7)
}
  0x4c   : > { %s1804_s24 = smov 384   ;;  %s1805_s15 = smov 128  }
  0x4d   : > { %s1806_s16 = smov 8   ;;  %p2128_p10 = scmp.ne.s32.totalorder %s2124_s22, 0 }
  0x4e   : > { %1540 = dma.hbm_to_vmem [thread:$0]  (!%p2127_p8), %s1933_s25, 4096, %s1938_s6, %s1940_s8, %s1804_s24, %s1805_s15, %s1806_s16  }
  0x4f   : > { %185 = sbr.rel (%p2128_p10) target bundleno = 445 (0x1bd), region = 28  ;;  %p2129_p1 = scmp.ne.s32.totalorder (!%p2128_p10), %s2119_s17, 0 }
  0x56   : > { %1765 = dma.done.wait (%p2129_p1), [#allocation4], 8192  }
  0x57   : > { %1767 = vsyncadd (%p2129_p1), [#allocation4], 4294959104  ;;  %s1975_s18 = sand.u32 1, %s1782_s10   ;;  %p2130_p8 = scmp.ne.s32.totalorder %s2121_s19, 0 }
  0x58   : > { %s1388_s30 = sshll.u32 %s1975_s18, 8  ;;  %s192_s29 = scalar_lea.sflag [#allocation7], %s1975_s18 }
  0x59   : > { %s1981_s26 = scalar_lea.vmem [#allocation6], %s1388_s30 }
  0x5a   : > { %1769 = dma.done.wait (%p2130_p8), %s192_s29, 4096  }
  0x5b   : > { %1771 = vsyncadd (%p2130_p8), %s192_s29, 4294963200  ;;  %v1606_v0 = vld [vmem:[%s1981_s26 + $0x4] ss:$8 sps:$4 sm:$0xff]   ;;  %v1608_v1 = vld [vmem:[%s1981_s26] ss:$8 sps:$4 sm:$0xff]   ;;  %s2021_s17 = scalar_lea.vmem [#allocation8], %s1388_s30 }
  0x5c   : > { %642 = vmatprep.subr.bf16.mxu0 %v1606_v0  ;;  %1493 = vmatprep.subr.bf16.mxu1 %v1606_v0  ;;  %v1609_v2 = vld [vmem:[%s1981_s26 + $0x14] ss:$8 sps:$4 sm:$0xff]   ;;  %v1611_v3 = vld [vmem:[%s1981_s26 + $0x10] ss:$8 sps:$4 sm:$0xff]   ;;  %v1612_v4 = vld [vmem:[%s1981_s26 + $0x24] ss:$8 sps:$4 sm:$0xff]  }
  0x5d   : > { %643 = vmatpush1.bf16.msra.mxu0 %v1608_v1  ;;  %1509 = vmatpush1.bf16.msra.mxu1 %v1608_v1  ;;  %v1614_v5 = vld [vmem:[%s1981_s26 + $0x20] ss:$8 sps:$4 sm:$0xff]   ;;  %v1615_v6 = vld [vmem:[%s1981_s26 + $0x34] ss:$8 sps:$4 sm:$0xff]   ;;  %v1617_v7 = vld [vmem:[%s1981_s26 + $0x30] ss:$8 sps:$4 sm:$0xff]  }
  0x5e   : > { %644 = vmatprep.subr.bf16.mxu0 %v1609_v2  ;;  %1494 = vmatprep.subr.bf16.mxu1 %v1609_v2  ;;  %v1618_v8 = vld [vmem:[%s1981_s26 + $0x44] ss:$8 sps:$4 sm:$0xff]   ;;  %v1620_v9 = vld [vmem:[%s1981_s26 + $0x40] ss:$8 sps:$4 sm:$0xff]   ;;  %v1621_v10 = vld [vmem:[%s1981_s26 + $0x54] ss:$8 sps:$4 sm:$0xff]  }
  0x5f   : > { %v1623_v11 = vld [vmem:[%s1981_s26 + $0x50] ss:$8 sps:$4 sm:$0xff]   ;;  %v1624_v12 = vld [vmem:[%s1981_s26 + $0x64] ss:$8 sps:$4 sm:$0xff]   ;;  %v1626_v18 = vld [vmem:[%s1981_s26 + $0x60] ss:$8 sps:$4 sm:$0xff]  }
  0x60   : > { %v355_v13 = vld [vmem:[#allocation3 + $0x8] sm:$0xff]  ;;  %v357_v14 = vld [vmem:[#allocation3 + $0x18] sm:$0xff]  ;;  %v354_v38 = vld [vmem:[#allocation3] sm:$0xff]  ;;  %s1492_s19 = sshll.u32 %s1790_s12, 7  ;;  %s1271_s22 = sshll.u32 %s2021_s17, 4  ;;  %s2058_s22 = int_to_ptr.vmem [resolvable:$true] %s1271_s22 }
  0x61   : > { %645 = vmatpush1.bf16.msra.mxu0 %v1611_v3  ;;  %1510 = vmatpush1.bf16.msra.mxu1 %v1611_v3  ;;  %v419_v15 = vpack.c.bf16 %v357_v14, %v355_v13  ;;  %v387_v16 = vld [vmem:[#allocation3 + $0x108] sm:$0xff]  ;;  %v389_v17 = vld [vmem:[#allocation3 + $0x118] sm:$0xff]  ;;  %v356_v39 = vld [vmem:[#allocation3 + $0x10] sm:$0xff]  ;;  %s2056_s8 = scalar_lea.hbm %s2112_s2, %s1492_s19  ;;  %s1255_s12 = scalar_lea.sflag [#allocation5], %s1975_s18 }
  0x62   : > { %646 = vmatprep.subr.bf16.mxu0 %v1612_v4  ;;  %1495 = vmatprep.subr.bf16.mxu1 %v1612_v4  ;;  %v435_v19 = vpack.c.bf16 %v389_v17, %v387_v16  ;;  %v1627_v20 = vld [vmem:[%s1981_s26 + $0x74] ss:$8 sps:$4 sm:$0xff]   ;;  %v1629_v21 = vld [vmem:[%s1981_s26 + $0x70] ss:$8 sps:$4 sm:$0xff]   ;;  %v1630_v22 = vld [vmem:[%s1981_s26 + $0x84] ss:$8 sps:$4 sm:$0xff]   ;;  %v418_v46 = vpack.c.bf16 %v356_v39, %v354_v38 }
  0x63   : > { %674 = vmatprep.mubr.bf16.mxu0 %v419_v15  ;;  %v1632_v23 = vld [vmem:[%s1981_s26 + $0x80] ss:$8 sps:$4 sm:$0xff]   ;;  %v1633_v24 = vld [vmem:[%s1981_s26 + $0x94] ss:$8 sps:$4 sm:$0xff]   ;;  %v1635_v25 = vld [vmem:[%s1981_s26 + $0x90] ss:$8 sps:$4 sm:$0xff]  }
  0x64   : > { %754 = vmatprep.mubr.bf16.mxu1 %v435_v19  ;;  %v1636_v26 = vld [vmem:[%s1981_s26 + $0xa4] ss:$8 sps:$4 sm:$0xff]   ;;  %v1638_v27 = vld [vmem:[%s1981_s26 + $0xa0] ss:$8 sps:$4 sm:$0xff]   ;;  %v1639_v28 = vld [vmem:[%s1981_s26 + $0xb4] ss:$8 sps:$4 sm:$0xff]  }
  0x65   : > { %647 = vmatpush1.bf16.msra.mxu0 %v1614_v5  ;;  %1511 = vmatpush1.bf16.msra.mxu1 %v1614_v5  ;;  %v1641_v29 = vld [vmem:[%s1981_s26 + $0xb0] ss:$8 sps:$4 sm:$0xff]   ;;  %v1642_v30 = vld [vmem:[%s1981_s26 + $0xc4] ss:$8 sps:$4 sm:$0xff]   ;;  %v1644_v31 = vld [vmem:[%s1981_s26 + $0xc0] ss:$8 sps:$4 sm:$0xff]  }
  0x66   : > { %648 = vmatprep.subr.bf16.mxu0 %v1615_v6  ;;  %1496 = vmatprep.subr.bf16.mxu1 %v1615_v6  ;;  %v1645_v32 = vld [vmem:[%s1981_s26 + $0xd4] ss:$8 sps:$4 sm:$0xff]   ;;  %v1647_v33 = vld [vmem:[%s1981_s26 + $0xd0] ss:$8 sps:$4 sm:$0xff]   ;;  %v1648_v34 = vld [vmem:[%s1981_s26 + $0xe4] ss:$8 sps:$4 sm:$0xff]  }
  0x67   : > { %v1650_v35 = vld [vmem:[%s1981_s26 + $0xe0] ss:$8 sps:$4 sm:$0xff]   ;;  %v1651_v36 = vld [vmem:[%s1981_s26 + $0xf4] ss:$8 sps:$4 sm:$0xff]   ;;  %v1653_v37 = vld [vmem:[%s1981_s26 + $0xf0] ss:$8 sps:$4 sm:$0xff]  }
  0x68   : > { %v386_v40 = vld [vmem:[#allocation3 + $0x100] sm:$0xff]  ;;  %v388_v41 = vld [vmem:[#allocation3 + $0x110] sm:$0xff]  ;;  %v359_v42 = vld [vmem:[#allocation3 + $0x28] sm:$0xff]  ;;  %s1712_s3 = scalar_lea.vmem %s2058_s22, 4096  ;;  %p2131_p11 = scmp.ne.s32.totalorder %s2122_s20, 0 }
  0x69   : > { %649 = vmatpush1.bf16.msra.mxu0 %v1617_v7  ;;  %1512 = vmatpush1.bf16.msra.mxu1 %v1617_v7  ;;  %v361_v43 = vld [vmem:[#allocation3 + $0x38] sm:$0xff]  ;;  %v391_v44 = vld [vmem:[#allocation3 + $0x128] sm:$0xff]  ;;  %v434_v47 = vpack.c.bf16 %v388_v41, %v386_v40  ;;  %v358_v50 = vld [vmem:[#allocation3 + $0x20] sm:$0xff]  ;;  %p1713_p9 = scmp.ne.s32.totalorder %s2058_s22, %s1712_s3  ;;  %s1807_s23 = smov [#allocation8]  }
  0x6a   : > { %650 = vmatprep.subr.bf16.mxu0 %v1618_v8  ;;  %1497 = vmatprep.subr.bf16.mxu1 %v1618_v8  ;;  %v393_v45 = vld [vmem:[#allocation3 + $0x138] sm:$0xff]  ;;  %v421_v48 = vpack.c.bf16 %v361_v43, %v359_v42  ;;  %v360_v51 = vld [vmem:[#allocation3 + $0x30] sm:$0xff]  ;;  %v390_v52 = vld [vmem:[#allocation3 + $0x120] sm:$0xff]  ;;  %s1716_s28 = sshll.u32 %s1807_s23, 4  ;;  %s1717_s28 = int_to_ptr.vmem [resolvable:$false] %s1716_s28 }
  0x6b   : > { %v437_v49 = vpack.c.bf16 %v393_v45, %v391_v44  ;;  %v392_v53 = vld [vmem:[#allocation3 + $0x130] sm:$0xff]  ;;  %v363_v54 = vld [vmem:[#allocation3 + $0x48] sm:$0xff]  ;;  %v365_v55 = vld [vmem:[#allocation3 + $0x58] sm:$0xff]  ;;  %v420_v58 = vpack.c.bf16 %v360_v51, %v358_v50  ;;  %p1714_p4 = pnand %p1713_p9, %p2131_p11  ;;  %s1718_s4 = scalar_lea.vmem %s1717_s28, 8192 }
  0x6c   : > { %v395_v56 = vld [vmem:[#allocation3 + $0x148] sm:$0xff]  ;;  %v397_v57 = vld [vmem:[#allocation3 + $0x158] sm:$0xff]  ;;  %v436_v59 = vpack.c.bf16 %v392_v53, %v390_v52  ;;  %v423_v60 = vpack.c.bf16 %v365_v55, %v363_v54  ;;  %v362_v62 = vld [vmem:[#allocation3 + $0x40] sm:$0xff]  ;;  %p1719_p0 = scmp.lt.s32.totalorder %s2058_s22, %s1717_s28  ;;  %p1720_p5 = scmp.lt.s32.totalorder %s1718_s4, %s1712_s3 }
  0x6d   : > { %651 = vmatpush1.bf16.msra.mxu0 %v1620_v9  ;;  %1513 = vmatpush1.bf16.msra.mxu1 %v1620_v9  ;;  %v439_v61 = vpack.c.bf16 %v397_v57, %v395_v56  ;;  %v364_v63 = vld [vmem:[#allocation3 + $0x50] sm:$0xff]  ;;  %v394_v0 = vld [vmem:[#allocation3 + $0x140] sm:$0xff]  ;;  %v367_v2 = vld [vmem:[#allocation3 + $0x68] sm:$0xff]  ;;  %p1715_p13 = pneg %p1714_p4 }
  0x6e   : > { %652 = vmatprep.subr.bf16.mxu0 %v1621_v10  ;;  %1498 = vmatprep.subr.bf16.mxu1 %v1621_v10  ;;  %v396_v1 = vld [vmem:[#allocation3 + $0x150] sm:$0xff]  ;;  %v369_v3 = vld [vmem:[#allocation3 + $0x78] sm:$0xff]  ;;  %v399_v4 = vld [vmem:[#allocation3 + $0x168] sm:$0xff]  ;;  %v422_v6 = vpack.c.bf16 %v364_v63, %v362_v62  ;;  %p1721_p3 = por %p1720_p5, %p1719_p0 }
  0x6f   : > { %v401_v5 = vld [vmem:[#allocation3 + $0x178] sm:$0xff]  ;;  %v438_v7 = vpack.c.bf16 %v396_v1, %v394_v0  ;;  %v425_v8 = vpack.c.bf16 %v369_v3, %v367_v2  ;;  %v366_v10 = vld [vmem:[#allocation3 + $0x60] sm:$0xff]  ;;  %v400_v13 = vld [vmem:[#allocation3 + $0x170] sm:$0xff] }
  0x70   : > { %v441_v9 = vpack.c.bf16 %v401_v5, %v399_v4  ;;  %v371_v14 = vld [vmem:[#allocation3 + $0x88] sm:$0xff]  ;;  %v373_v15 = vld [vmem:[#allocation3 + $0x98] sm:$0xff]  ;;  %p1722_p6 = pnand %p1721_p3, %p1715_p13 }
  0x71   : > { %653 = vmatpush1.bf16.msra.mxu0 %v1623_v11  ;;  %1514 = vmatpush1.bf16.msra.mxu1 %v1623_v11  ;;  %v368_v11 = vld [vmem:[#allocation3 + $0x70] sm:$0xff]  ;;  %v403_v16 = vld [vmem:[#allocation3 + $0x188] sm:$0xff]  ;;  %v405_v17 = vld [vmem:[#allocation3 + $0x198] sm:$0xff] }
  0x72   : > { %654 = vmatprep.subr.bf16.mxu0 %v1624_v12  ;;  %1499 = vmatprep.subr.bf16.mxu1 %v1624_v12  ;;  %v398_v12 = vld [vmem:[#allocation3 + $0x160] sm:$0xff]  ;;  %v379_v38 = vld [vmem:[#allocation3 + $0xc8] sm:$0xff]  ;;  %v381_v39 = vld [vmem:[#allocation3 + $0xd8] sm:$0xff] }
  0x73   : > { %v440_v19 = vpack.c.bf16 %v400_v13, %v398_v12  ;;  %v411_v40 = vld [vmem:[#allocation3 + $0x1c8] sm:$0xff]  ;;  %v413_v41 = vld [vmem:[#allocation3 + $0x1d8] sm:$0xff]  ;;  %v431_v44 = vpack.c.bf16 %v381_v39, %v379_v38 }
  0x74   : > { %v447_v45 = vpack.c.bf16 %v413_v41, %v411_v40  ;;  %v383_v50 = vld [vmem:[#allocation3 + $0xe8] sm:$0xff]  ;;  %v385_v51 = vld [vmem:[#allocation3 + $0xf8] sm:$0xff] }
  0x75   : > { %655 = vmatpush1.bf16.msra.mxu0 %v1626_v18  ;;  %1515 = vmatpush1.bf16.msra.mxu1 %v1626_v18  ;;  %v424_v18 = vpack.c.bf16 %v368_v11, %v366_v10  ;;  %v415_v52 = vld [vmem:[#allocation3 + $0x1e8] sm:$0xff]  ;;  %v417_v53 = vld [vmem:[#allocation3 + $0x1f8] sm:$0xff]  ;;  %v433_v56 = vpack.c.bf16 %v385_v51, %v383_v50 }
  0x76   : > { %656 = vmatprep.subr.bf16.mxu0 %v1627_v20  ;;  %1500 = vmatprep.subr.bf16.mxu1 %v1627_v20  ;;  %v427_v20 = vpack.c.bf16 %v373_v15, %v371_v14  ;;  %v449_v57 = vpack.c.bf16 %v417_v53, %v415_v52 }
  0x79   : > { %657 = vmatpush1.bf16.msra.mxu0 %v1629_v21  ;;  %1516 = vmatpush1.bf16.msra.mxu1 %v1629_v21  ;;  %v443_v21 = vpack.c.bf16 %v405_v17, %v403_v16 }
  0x7a   : > { %658 = vmatprep.subr.bf16.mxu0 %v1630_v22  ;;  %1501 = vmatprep.subr.bf16.mxu1 %v1630_v22  ;;  %v370_v22 = vld [vmem:[#allocation3 + $0x80] sm:$0xff] }
  0x7d   : > { %659 = vmatpush1.bf16.msra.mxu0 %v1632_v23  ;;  %1517 = vmatpush1.bf16.msra.mxu1 %v1632_v23  ;;  %v372_v23 = vld [vmem:[#allocation3 + $0x90] sm:$0xff] }
  0x7e   : > { %660 = vmatprep.subr.bf16.mxu0 %v1633_v24  ;;  %1502 = vmatprep.subr.bf16.mxu1 %v1633_v24  ;;  %v402_v24 = vld [vmem:[#allocation3 + $0x180] sm:$0xff] }
  0x81   : > { %661 = vmatpush1.bf16.msra.mxu0 %v1635_v25  ;;  %1518 = vmatpush1.bf16.msra.mxu1 %v1635_v25  ;;  %v404_v25 = vld [vmem:[#allocation3 + $0x190] sm:$0xff] }
  0x82   : > { %662 = vmatprep.subr.bf16.mxu0 %v1636_v26  ;;  %1503 = vmatprep.subr.bf16.mxu1 %v1636_v26  ;;  %v375_v26 = vld [vmem:[#allocation3 + $0xa8] sm:$0xff] }
  0x85   : > { %663 = vmatpush1.bf16.msra.mxu0 %v1638_v27  ;;  %1519 = vmatpush1.bf16.msra.mxu1 %v1638_v27  ;;  %v377_v27 = vld [vmem:[#allocation3 + $0xb8] sm:$0xff] }
  0x86   : > { %664 = vmatprep.subr.bf16.mxu0 %v1639_v28  ;;  %1504 = vmatprep.subr.bf16.mxu1 %v1639_v28  ;;  %v407_v28 = vld [vmem:[#allocation3 + $0x1a8] sm:$0xff] }
  0x89   : > { %665 = vmatpush1.bf16.msra.mxu0 %v1641_v29  ;;  %1520 = vmatpush1.bf16.msra.mxu1 %v1641_v29  ;;  %v409_v29 = vld [vmem:[#allocation3 + $0x1b8] sm:$0xff] }
  0x8a   : > { %666 = vmatprep.subr.bf16.mxu0 %v1642_v30  ;;  %1505 = vmatprep.subr.bf16.mxu1 %v1642_v30  ;;  %v426_v30 = vpack.c.bf16 %v372_v23, %v370_v22 }
  0x8d   : > { %667 = vmatpush1.bf16.msra.mxu0 %v1644_v31  ;;  %1521 = vmatpush1.bf16.msra.mxu1 %v1644_v31  ;;  %v442_v31 = vpack.c.bf16 %v404_v25, %v402_v24 }
  0x8e   : > { %668 = vmatprep.subr.bf16.mxu0 %v1645_v32  ;;  %1506 = vmatprep.subr.bf16.mxu1 %v1645_v32  ;;  %v429_v32 = vpack.c.bf16 %v377_v27, %v375_v26 }
  0x91   : > { %669 = vmatpush1.bf16.msra.mxu0 %v1647_v33  ;;  %1522 = vmatpush1.bf16.msra.mxu1 %v1647_v33  ;;  %v445_v33 = vpack.c.bf16 %v409_v29, %v407_v28 }
  0x92   : > { %670 = vmatprep.subr.bf16.mxu0 %v1648_v34  ;;  %1507 = vmatprep.subr.bf16.mxu1 %v1648_v34  ;;  %v374_v34 = vld [vmem:[#allocation3 + $0xa0] sm:$0xff] }
  0x95   : > { %671 = vmatpush1.bf16.msra.mxu0 %v1650_v35  ;;  %1523 = vmatpush1.bf16.msra.mxu1 %v1650_v35  ;;  %v376_v35 = vld [vmem:[#allocation3 + $0xb0] sm:$0xff] }
  0x96   : > { %672 = vmatprep.subr.bf16.mxu0 %v1651_v36  ;;  %1508 = vmatprep.subr.bf16.mxu1 %v1651_v36  ;;  %v406_v36 = vld [vmem:[#allocation3 + $0x1a0] sm:$0xff]  ;;  %v428_v42 = vpack.c.bf16 %v376_v35, %v374_v34 }
  0x99   : > { %673 = vmatpush1.bf16.msra.mxu0 %v1653_v37  ;;  %1524 = vmatpush1.bf16.msra.mxu1 %v1653_v37  ;;  %v408_v37 = vld [vmem:[#allocation3 + $0x1b0] sm:$0xff] }
  0x9a   : > { %v444_v43 = vpack.c.bf16 %v408_v37, %v406_v36 }
  0x9c   : > { %675 = vmatmul.mubr.bf16.vlgmr.msra.gmra.mrb[0].mxu0 %v418_v46  ;;  %755 = vmatmul.mubr.bf16.vlgmr.msra.gmra.mrb[0].mxu1 %v434_v47  ;;  %v378_v46 = vld [vmem:[#allocation3 + $0xc0] sm:$0xff]  ;;  %v380_v47 = vld [vmem:[#allocation3 + $0xd0] sm:$0xff] }
  0x9d   : > { %684 = vmatprep.mubr.bf16.mxu0 %v421_v48  ;;  %764 = vmatprep.mubr.bf16.mxu1 %v437_v49  ;;  %v410_v48 = vld [vmem:[#allocation3 + $0x1c0] sm:$0xff]  ;;  %v412_v49 = vld [vmem:[#allocation3 + $0x1d0] sm:$0xff]  ;;  %v430_v54 = vpack.c.bf16 %v380_v47, %v378_v46 }
  0x9e   : > { %v446_v55 = vpack.c.bf16 %v412_v49, %v410_v48 }
  0xa4   : > { %685 = vmatmul.mubr.bf16.gmra.mrb[4].mxu0 %v420_v58  ;;  %765 = vmatmul.mubr.bf16.gmra.mrb[4].mxu1 %v436_v59  ;;  %v382_v58 = vld [vmem:[#allocation3 + $0xe0] sm:$0xff]  ;;  %v384_v59 = vld [vmem:[#allocation3 + $0xf0] sm:$0xff] }
  0xa5   : > { %694 = vmatprep.mubr.bf16.mxu0 %v423_v60  ;;  %774 = vmatprep.mubr.bf16.mxu1 %v439_v61  ;;  %v414_v60 = vld [vmem:[#allocation3 + $0x1e0] sm:$0xff]  ;;  %v416_v61 = vld [vmem:[#allocation3 + $0x1f0] sm:$0xff]  ;;  %v432_v62 = vpack.c.bf16 %v384_v59, %v382_v58 }
  0xa6   : > { %v448_v63 = vpack.c.bf16 %v416_v61, %v414_v60 }
  0xac   : > { %695 = vmatmul.mubr.bf16.gmra.mrb[8].mxu0 %v422_v6  ;;  %775 = vmatmul.mubr.bf16.gmra.mrb[8].mxu1 %v438_v7 }
  0xad   : > { %704 = vmatprep.mubr.bf16.mxu0 %v425_v8  ;;  %784 = vmatprep.mubr.bf16.mxu1 %v441_v9 }
  0xb4   : > { %705 = vmatmul.mubr.bf16.gmra.mrb[12].mxu0 %v424_v18  ;;  %785 = vmatmul.mubr.bf16.gmra.mrb[12].mxu1 %v440_v19 }
  0xb5   : > { %714 = vmatprep.mubr.bf16.mxu0 %v427_v20  ;;  %794 = vmatprep.mubr.bf16.mxu1 %v443_v21 }
  0xbc   : > { %715 = vmatmul.mubr.bf16.gmra.mrb[16].mxu0 %v426_v30  ;;  %795 = vmatmul.mubr.bf16.gmra.mrb[16].mxu1 %v442_v31 }
  0xbd   : > { %724 = vmatprep.mubr.bf16.mxu0 %v429_v32  ;;  %804 = vmatprep.mubr.bf16.mxu1 %v445_v33 }
  0xc4   : > { %725 = vmatmul.mubr.bf16.gmra.mrb[20].mxu0 %v428_v42  ;;  %805 = vmatmul.mubr.bf16.gmra.mrb[20].mxu1 %v444_v43 }
  0xc5   : > { %734 = vmatprep.mubr.bf16.mxu0 %v431_v44  ;;  %814 = vmatprep.mubr.bf16.mxu1 %v447_v45 }
  0xcc   : > { %735 = vmatmul.mubr.bf16.gmra.mrb[24].mxu0 %v430_v54  ;;  %815 = vmatmul.mubr.bf16.gmra.mrb[24].mxu1 %v446_v55 }
  0xcd   : > { %744 = vmatprep.mubr.bf16.mxu0 %v433_v56  ;;  %824 = vmatprep.mubr.bf16.mxu1 %v449_v57 }
  0xd4   : > { %745 = vmatmul.mubr.bf16.gmra.mrb[28].mxu0 %v432_v62  ;;  %825 = vmatmul.mubr.bf16.gmra.mrb[28].mxu1 %v448_v63 }
 0x16f   : > { %v676_v0 = vpop.f32.mrb[0].mxu0  ;;  %v756_v1 = vpop.f32.mrb[0].mxu1 }
 0x170   : > { %v678_v2 = vpop.f32.mrb[1].mxu0  ;;  %v758_v3 = vpop.f32.mrb[1].mxu1 }
 0x171   : > { %v1460_v4 = vpack.c.bf16 %v678_v2, %v676_v0  ;;  %v1476_v5 = vpack.c.bf16 %v758_v3, %v756_v1  ;;  %v680_v6 = vpop.f32.mrb[2].mxu0  ;;  %v760_v7 = vpop.f32.mrb[2].mxu1 }
 0x172   : > { %v682_v8 = vpop.f32.mrb[3].mxu0  ;;  %v762_v9 = vpop.f32.mrb[3].mxu1 }
 0x173   : > { %1222 = vst [vmem:[%s2021_s17] sm:$0xff] %v1460_v4  ;;  %1238 = vst [vmem:[%s2021_s17 + $0x80] sm:$0xff] %v1476_v5  ;;  %v1461_v10 = vpack.c.bf16 %v682_v8, %v680_v6  ;;  %v1477_v11 = vpack.c.bf16 %v762_v9, %v760_v7 }
 0x175   : > { %1223 = vst [vmem:[%s2021_s17 + $0x8] sm:$0xff] %v1461_v10  ;;  %1239 = vst [vmem:[%s2021_s17 + $0x88] sm:$0xff] %v1477_v11 }
 0x177   : > { %v686_v12 = vpop.f32.mrb[4].mxu0  ;;  %v766_v13 = vpop.f32.mrb[4].mxu1 }
 0x178   : > { %v688_v14 = vpop.f32.mrb[5].mxu0  ;;  %v768_v15 = vpop.f32.mrb[5].mxu1 }
 0x179   : > { %v1462_v16 = vpack.c.bf16 %v688_v14, %v686_v12  ;;  %v1478_v17 = vpack.c.bf16 %v768_v15, %v766_v13  ;;  %v690_v18 = vpop.f32.mrb[6].mxu0  ;;  %v770_v19 = vpop.f32.mrb[6].mxu1 }
 0x17a   : > { %v692_v20 = vpop.f32.mrb[7].mxu0  ;;  %v772_v21 = vpop.f32.mrb[7].mxu1 }
 0x17b   : > { %1224 = vst [vmem:[%s2021_s17 + $0x10] sm:$0xff] %v1462_v16  ;;  %1240 = vst [vmem:[%s2021_s17 + $0x90] sm:$0xff] %v1478_v17  ;;  %v1463_v22 = vpack.c.bf16 %v692_v20, %v690_v18  ;;  %v1479_v23 = vpack.c.bf16 %v772_v21, %v770_v19 }
 0x17d   : > { %1225 = vst [vmem:[%s2021_s17 + $0x18] sm:$0xff] %v1463_v22  ;;  %1241 = vst [vmem:[%s2021_s17 + $0x98] sm:$0xff] %v1479_v23 }
 0x17f   : > { %v696_v24 = vpop.f32.mrb[8].mxu0  ;;  %v776_v25 = vpop.f32.mrb[8].mxu1 }
 0x180   : > { %v698_v26 = vpop.f32.mrb[9].mxu0  ;;  %v778_v27 = vpop.f32.mrb[9].mxu1 }
 0x181   : > { %v1464_v28 = vpack.c.bf16 %v698_v26, %v696_v24  ;;  %v1480_v29 = vpack.c.bf16 %v778_v27, %v776_v25  ;;  %v700_v30 = vpop.f32.mrb[10].mxu0  ;;  %v780_v31 = vpop.f32.mrb[10].mxu1 }
 0x182   : > { %v702_v32 = vpop.f32.mrb[11].mxu0  ;;  %v782_v33 = vpop.f32.mrb[11].mxu1 }
 0x183   : > { %1226 = vst [vmem:[%s2021_s17 + $0x20] sm:$0xff] %v1464_v28  ;;  %1242 = vst [vmem:[%s2021_s17 + $0xa0] sm:$0xff] %v1480_v29  ;;  %v1465_v34 = vpack.c.bf16 %v702_v32, %v700_v30  ;;  %v1481_v35 = vpack.c.bf16 %v782_v33, %v780_v31 }
 0x185   : > { %1227 = vst [vmem:[%s2021_s17 + $0x28] sm:$0xff] %v1465_v34  ;;  %1243 = vst [vmem:[%s2021_s17 + $0xa8] sm:$0xff] %v1481_v35 }
 0x187   : > { %v706_v36 = vpop.f32.mrb[12].mxu0  ;;  %v786_v37 = vpop.f32.mrb[12].mxu1 }
 0x188   : > { %v708_v38 = vpop.f32.mrb[13].mxu0  ;;  %v788_v39 = vpop.f32.mrb[13].mxu1 }
 0x189   : > { %v1466_v40 = vpack.c.bf16 %v708_v38, %v706_v36  ;;  %v1482_v41 = vpack.c.bf16 %v788_v39, %v786_v37  ;;  %v710_v42 = vpop.f32.mrb[14].mxu0  ;;  %v790_v43 = vpop.f32.mrb[14].mxu1 }
 0x18a   : > { %v712_v44 = vpop.f32.mrb[15].mxu0  ;;  %v792_v45 = vpop.f32.mrb[15].mxu1 }
 0x18b   : > { %1228 = vst [vmem:[%s2021_s17 + $0x30] sm:$0xff] %v1466_v40  ;;  %1244 = vst [vmem:[%s2021_s17 + $0xb0] sm:$0xff] %v1482_v41  ;;  %v1467_v46 = vpack.c.bf16 %v712_v44, %v710_v42  ;;  %v1483_v47 = vpack.c.bf16 %v792_v45, %v790_v43 }
 0x18d   : > { %1229 = vst [vmem:[%s2021_s17 + $0x38] sm:$0xff] %v1467_v46  ;;  %1245 = vst [vmem:[%s2021_s17 + $0xb8] sm:$0xff] %v1483_v47 }
 0x18f   : > { %v716_v48 = vpop.f32.mrb[16].mxu0  ;;  %v796_v49 = vpop.f32.mrb[16].mxu1 }
 0x190   : > { %v718_v50 = vpop.f32.mrb[17].mxu0  ;;  %v798_v51 = vpop.f32.mrb[17].mxu1 }
 0x191   : > { %v1468_v52 = vpack.c.bf16 %v718_v50, %v716_v48  ;;  %v1484_v53 = vpack.c.bf16 %v798_v51, %v796_v49  ;;  %v720_v54 = vpop.f32.mrb[18].mxu0  ;;  %v800_v55 = vpop.f32.mrb[18].mxu1 }
 0x192   : > { %v722_v56 = vpop.f32.mrb[19].mxu0  ;;  %v802_v57 = vpop.f32.mrb[19].mxu1 }
 0x193   : > { %1230 = vst [vmem:[%s2021_s17 + $0x40] sm:$0xff] %v1468_v52  ;;  %1246 = vst [vmem:[%s2021_s17 + $0xc0] sm:$0xff] %v1484_v53  ;;  %v1469_v58 = vpack.c.bf16 %v722_v56, %v720_v54  ;;  %v1485_v59 = vpack.c.bf16 %v802_v57, %v800_v55 }
 0x195   : > { %1231 = vst [vmem:[%s2021_s17 + $0x48] sm:$0xff] %v1469_v58  ;;  %1247 = vst [vmem:[%s2021_s17 + $0xc8] sm:$0xff] %v1485_v59 }
 0x197   : > { %v726_v60 = vpop.f32.mrb[20].mxu0  ;;  %v806_v61 = vpop.f32.mrb[20].mxu1 }
 0x198   : > { %v728_v62 = vpop.f32.mrb[21].mxu0  ;;  %v808_v63 = vpop.f32.mrb[21].mxu1 }
 0x199   : > { %v1470_v0 = vpack.c.bf16 %v728_v62, %v726_v60  ;;  %v1486_v1 = vpack.c.bf16 %v808_v63, %v806_v61  ;;  %v730_v2 = vpop.f32.mrb[22].mxu0  ;;  %v810_v3 = vpop.f32.mrb[22].mxu1 }
 0x19a   : > { %v732_v4 = vpop.f32.mrb[23].mxu0  ;;  %v812_v5 = vpop.f32.mrb[23].mxu1 }
 0x19b   : > { %1232 = vst [vmem:[%s2021_s17 + $0x50] sm:$0xff] %v1470_v0  ;;  %1248 = vst [vmem:[%s2021_s17 + $0xd0] sm:$0xff] %v1486_v1  ;;  %v1471_v6 = vpack.c.bf16 %v732_v4, %v730_v2  ;;  %v1487_v7 = vpack.c.bf16 %v812_v5, %v810_v3 }
 0x19d   : > { %1233 = vst [vmem:[%s2021_s17 + $0x58] sm:$0xff] %v1471_v6  ;;  %1249 = vst [vmem:[%s2021_s17 + $0xd8] sm:$0xff] %v1487_v7 }
 0x19f   : > { %v736_v8 = vpop.f32.mrb[24].mxu0  ;;  %v816_v9 = vpop.f32.mrb[24].mxu1 }
 0x1a0   : > { %v738_v10 = vpop.f32.mrb[25].mxu0  ;;  %v818_v11 = vpop.f32.mrb[25].mxu1 }
 0x1a1   : > { %v1472_v12 = vpack.c.bf16 %v738_v10, %v736_v8  ;;  %v1488_v13 = vpack.c.bf16 %v818_v11, %v816_v9  ;;  %v740_v14 = vpop.f32.mrb[26].mxu0  ;;  %v820_v15 = vpop.f32.mrb[26].mxu1 }
 0x1a2   : > { %v742_v16 = vpop.f32.mrb[27].mxu0  ;;  %v822_v17 = vpop.f32.mrb[27].mxu1 }
 0x1a3   : > { %1234 = vst [vmem:[%s2021_s17 + $0x60] sm:$0xff] %v1472_v12  ;;  %1250 = vst [vmem:[%s2021_s17 + $0xe0] sm:$0xff] %v1488_v13  ;;  %v1473_v18 = vpack.c.bf16 %v742_v16, %v740_v14  ;;  %v1489_v19 = vpack.c.bf16 %v822_v17, %v820_v15 }
 0x1a5   : > { %1235 = vst [vmem:[%s2021_s17 + $0x68] sm:$0xff] %v1473_v18  ;;  %1251 = vst [vmem:[%s2021_s17 + $0xe8] sm:$0xff] %v1489_v19 }
 0x1a7   : > { %v746_v20 = vpop.f32.mrb[28].mxu0  ;;  %v826_v21 = vpop.f32.mrb[28].mxu1 }
 0x1a8   : > { %v748_v22 = vpop.f32.mrb[29].mxu0  ;;  %v828_v23 = vpop.f32.mrb[29].mxu1 }
 0x1a9   : > { %v1474_v24 = vpack.c.bf16 %v748_v22, %v746_v20  ;;  %v1490_v25 = vpack.c.bf16 %v828_v23, %v826_v21  ;;  %v750_v26 = vpop.f32.mrb[30].mxu0  ;;  %v830_v27 = vpop.f32.mrb[30].mxu1 }
 0x1aa   : > { %v752_v28 = vpop.f32.mrb[31].mxu0  ;;  %v832_v29 = vpop.f32.mrb[31].mxu1 }
 0x1ab   : > { %1236 = vst [vmem:[%s2021_s17 + $0x70] sm:$0xff] %v1474_v24  ;;  %1252 = vst [vmem:[%s2021_s17 + $0xf0] sm:$0xff] %v1490_v25  ;;  %v1475_v30 = vpack.c.bf16 %v752_v28, %v750_v26  ;;  %v1491_v31 = vpack.c.bf16 %v832_v29, %v830_v27 }
 0x1ad   : > { %1237 = vst [vmem:[%s2021_s17 + $0x78] sm:$0xff] %v1475_v30  ;;  %1253 = vst [vmem:[%s2021_s17 + $0xf8] sm:$0xff] %v1491_v31 }
 0x1ae   : > { %1725 = shalt.err (!%p1722_p6)
}
 0x1af   : > { %s1726_s5 = scalar_lea.hbm %s2056_s8, 4096  ;;  %s1730_s16 = scalar_lea.hbm %s2112_s2, 12288 }
 0x1b0   : > { %p1727_p12 = scmp.ne.s32.totalorder %s2056_s8, %s1726_s5  ;;  %p1731_p10 = scmp.lt.u32.totalorder %s2056_s8, %s2112_s2 }
 0x1b1   : > { %p1732_p1 = scmp.lt.u32.totalorder %s1730_s16, %s1726_s5  ;;  %p1734_p9 = scmp.lt.u32.totalorder %s1726_s5, %s2056_s8 }
 0x1b2   : > { %p1728_p2 = pnand %p1727_p12, %p2131_p11 }
 0x1b3   : > { %p1733_p8 = por %p1732_p1, %p1731_p10 }
 0x1b4   : > { %p1729_p7 = pneg %p1728_p2 }
 0x1b5   : > { %p1735_p4 = por %p1734_p9, %p1733_p8 }
 0x1b7   : > { %p1736_p13 = pnand %p1735_p4, %p1729_p7 }
 0x1b9   : > { %1739 = shalt.err (!%p1736_p13)
}
 0x1ba   : > { %s1808_s26 = smov 128   ;;  %s1809_s17 = smov 384  }
 0x1bb   : > { %s1810_s19 = smov 8  }
 0x1bc   : > { %1531 = dma.vmem_to_hbm [thread:$0]  (%p2131_p11), %s2058_s22, 4096, %s2056_s8, %s1255_s12, %s1808_s26, %s1809_s17, %s1810_s19  }
 0x1bd PF: > { %p1548_p0 = scmp.ge.s32.totalorder %s1798_s14, 2  ;;  %s1286_s25 = sand.u32 1, %s1778_s9  }
 0x1be   : > { %p2132_p5 = scmp.ne.s32.totalorder %s2123_s21, 0  ;;  %s1287_s6 = scalar_lea.sflag [#allocation5], %s1286_s25 }
 0x1c0   : > { %p1542_p3 = pnand %p1548_p0, %p2132_p5 }
 0x1c2   : > { %1773 = dma.done.wait (!%p1542_p3), %s1287_s6, 4096  }
 0x1c3   : > { %1775 = vsyncadd (!%p1542_p3), %s1287_s6, 4294963200  ;;  %s19_s14 = sadd.s32 1, %s1798_s14   ;;  %s2133_s9 = smov %s1782_s10 }
 0x1c4   : > { %p16_p6 = scmp.ge.s32.totalorder %s19_s14, 5   ;;  %s2134_s10 = smov %s1786_s11 }
 0x1c5   : > { %s2135_s11 = smov %s1936_s7  ;;  %s2136_s12 = smov %s1794_s13 }
 0x1c6   : > { %s2137_s13 = smov %s2139_s27  ;;  %18 = sbr.rel (!%p16_p6) target bundleno = 7 (0x7), region = 87 }
 0x1cd   :  { %1292 = vsyncpa [#allocation4], 1 }
 0x1ce   :  { %1294 = vsyncpa [#allocation4 + $0x1], 1 }
 0x1cf   :  { %1295 = vsyncpa [#allocation7], 1 }
 0x1d0   :  { %1297 = vsyncpa [#allocation7 + $0x1], 1 }
 0x1d1   :  { %1298 = vsyncpa [#allocation5], 1 }
 0x1d2   :  { %1300 = vsyncpa [#allocation5 + $0x1], 1 }

</bundles_post_ra>
